<compile_context>
chip_gen: v5e
topology: v5e:2x2
jax: 0.10.0
libtpu: 0.0.40
codegen_flags: <defaults>
</compile_context>

<pallas_src>
import functools

import jax
import jax.numpy as jnp
from jax.experimental import pallas as pl
from jax.experimental.pallas import tpu as pltpu


def _round_up(v, m):
    return ((v + m - 1) // m) * m


def _residual_ff_kernel(x_ref, w1_ref, b1_ref, w2_ref, b2_ref, o_ref, acc_ref):
    # x_ref: (TILE_T, Dp)   w1_ref: (Dp, TILE_H)   b1_ref: (1, TILE_H)
    # w2_ref: (TILE_H, Dp)  b2_ref: (1, Dp)        o_ref: (TILE_T, Dp)
    # acc_ref: (TILE_T, Dp) f32 scratch, accumulates over hidden chunks.
    j = pl.program_id(1)               # hidden-chunk index (reduction axis)
    nh = pl.num_programs(1)

    @pl.when(j == 0)
    def _init():
        acc_ref[...] = jnp.zeros_like(acc_ref)

    x = x_ref[...]                     # storage dtype (kept for the residual)
    b1 = b1_ref[...].astype(jnp.float32)

    # Linear(D -> H chunk): MXU fed in the weight dtype, f32 accumulation.
    h = jnp.dot(x.astype(w1_ref.dtype), w1_ref[...],
                preferred_element_type=jnp.float32) + b1
    # TODO(synk): PyTorch nn.GELU defaults to exact erf; tanh approximation used here.
    h = jax.nn.gelu(h, approximate=True)

    # Linear(H chunk -> D): partial products accumulate across hidden chunks.
    acc_ref[...] += jnp.dot(h.astype(w2_ref.dtype), w2_ref[...],
                            preferred_element_type=jnp.float32)

    @pl.when(j == nh - 1)
    def _finalize():
        b2 = b2_ref[...].astype(jnp.float32)
        # Residual: fn(x) + x  (f32 math, downcast only at the final store).
        o_ref[...] = (acc_ref[...] + b2 + x.astype(jnp.float32)).astype(o_ref.dtype)


def residual_feedforward(x, w1, b1, w2, b2, *, mxu_dtype=None,
                         force_tile_t=None, force_tile_h=None):
    """Residual(FeedForward)(x) = FF(x) + x, fused in one Pallas kernel.

    x:  (B, N, D)
    w1: (D, H), b1: (H,)
    w2: (H, D), b2: (D,)
    mxu_dtype: optional dtype to feed the MXU with (e.g. jnp.bfloat16 when the
               model stores f32); accumulation stays f32 either way.
    """
    B, N, D = x.shape
    H = w1.shape[1]
    T = B * N

    x_dt = x.dtype
    w_dt = jnp.dtype(mxu_dtype) if mxu_dtype is not None else jnp.dtype(w1.dtype)
    x_isz = jnp.dtype(x_dt).itemsize
    w_isz = jnp.dtype(w_dt).itemsize
    sublane = {1: 32, 2: 16}.get(x_isz, 8)          # dtype-aware sublane multiple

    # Lane-dense padding of the channel dims only (zero pad is exact here:
    # zero weight rows/cols + zero bias keep padded channels at 0, gelu(0)==0).
    Dp = _round_up(D, 128)
    Hp = _round_up(H, 128)

    # ---- generation-aware VMEM budget -------------------------------------
    try:
        vmem_cap = int(pltpu.get_tpu_info().vmem_capacity_bytes)
    except Exception:
        vmem_cap = 64 * 1024 * 1024                  # conservative (v7x)
    # v7x: ~52 MiB of its 64 MiB (headroom for Mosaic internal scratch);
    # v5e/v6e: ~105 MiB of 128 MiB.
    budget = min(int(0.82 * vmem_cap), vmem_cap - 8 * 1024 * 1024)
    max_tile_t = 512 if vmem_cap >= 96 * 1024 * 1024 else 256

    def vmem_estimate(tt, th, resident):
        w_bufs = 1 if resident else 2                # Buffered(1) when resident
        weights = w_bufs * (Dp * th + th + th * Dp) * w_isz + Dp * w_isz  # + b2
        io = 2 * 2 * tt * Dp * x_isz                 # double-buffered x / out tiles
        acc = tt * Dp * 4                            # f32 accumulator scratch
        interm = tt * th * (4 + w_isz)               # f32 hidden act + MXU-dtype copy
        return weights + io + acc + interm

    # ---- tile selection -----------------------------------------------------
    tile_t = min(max_tile_t, _round_up(T, sublane))
    if T > sublane:                                  # >= 2 token tiles when possible
        tile_t = min(tile_t, _round_up(pl.cdiv(T, 2), sublane))
    tile_t = max(tile_t, sublane)

    tile_h, resident = Hp, True
    while tile_t > 8 * sublane and vmem_estimate(tile_t, Hp, True) > budget:
        tile_t = max(sublane, _round_up(tile_t // 2, sublane))
    if vmem_estimate(tile_t, Hp, True) > budget:
        # Weights too large to keep resident (e.g. v7x with big D/H):
        # stream hidden chunks instead of collapsing tile_t.
        resident = False
        tile_t = min(max_tile_t, _round_up(min(max(T, sublane), 256), sublane))
        if T > sublane:
            tile_t = min(tile_t, _round_up(pl.cdiv(T, 2), sublane))
        units = Hp // 128
        tile_h = 128
        for d in range(1, units + 1):                # tile_h must divide Hp exactly
            if units % d:
                continue
            tile_h = Hp // d
            if vmem_estimate(tile_t, tile_h, False) <= budget:
                break
        while tile_t > sublane and vmem_estimate(tile_t, tile_h, False) > budget:
            tile_t = max(sublane, _round_up(tile_t // 2, sublane))

    if force_tile_t is not None:
        tile_t = max(sublane, _round_up(int(force_tile_t), sublane))
    if force_tile_h is not None:
        tile_h = min(_round_up(int(force_tile_h), 128), Hp)
        assert Hp % tile_h == 0, "tile_h must divide padded hidden dim"
        resident = tile_h == Hp

    nt = pl.cdiv(T, tile_t)                          # ragged last tile: masked writes
    nh = Hp // tile_h

    # ---- pad lane dims only (no token-dim HBM pad/slice) --------------------
    x2d = x.reshape(T, D)
    if Dp != D:
        x2d = jnp.pad(x2d, ((0, 0), (0, Dp - D)))
    w1p = jnp.pad(w1, ((0, Dp - D), (0, Hp - H))) if (Dp != D or Hp != H) else w1
    w2p = jnp.pad(w2, ((0, Hp - H), (0, Dp - D))) if (Dp != D or Hp != H) else w2
    b1p = (jnp.pad(b1, ((0, Hp - H),)) if Hp != H else b1).reshape(1, Hp)
    b2p = (jnp.pad(b2, ((0, Dp - D),)) if Dp != D else b2).reshape(1, Dp)
    if w_dt != w1p.dtype:
        w1p = w1p.astype(w_dt)
        w2p = w2p.astype(w_dt)

    resident_mode = pl.Buffered(1)                   # constant index -> 1 buffer
    if resident:
        w1_spec = pl.BlockSpec((Dp, Hp), lambda i, j: (0, 0), pipeline_mode=resident_mode)
        b1_spec = pl.BlockSpec((1, Hp), lambda i, j: (0, 0), pipeline_mode=resident_mode)
        w2_spec = pl.BlockSpec((Hp, Dp), lambda i, j: (0, 0), pipeline_mode=resident_mode)
    else:                                            # streamed hidden chunks
        w1_spec = pl.BlockSpec((Dp, tile_h), lambda i, j: (0, j))
        b1_spec = pl.BlockSpec((1, tile_h), lambda i, j: (0, j))
        w2_spec = pl.BlockSpec((tile_h, Dp), lambda i, j: (j, 0))
    b2_spec = pl.BlockSpec((1, Dp), lambda i, j: (0, 0), pipeline_mode=resident_mode)

    cost = pl.CostEstimate(
        flops=4 * T * Dp * Hp,                       # two matmuls
        transcendentals=T * Hp,                      # one tanh per hidden element
        bytes_accessed=(2 * T * Dp) * x_isz + (2 * Dp * Hp) * w_isz + (Hp + Dp) * 4,
    )

    out2d = pl.pallas_call(
        _residual_ff_kernel,
        out_shape=jax.ShapeDtypeStruct((T, Dp), x_dt),
        grid_spec=pltpu.PrefetchScalarGridSpec(
            num_scalar_prefetch=0,
            grid=(nt, nh),
            in_specs=[
                pl.BlockSpec((tile_t, Dp), lambda i, j: (i, 0)),   # x tile (pipelined)
                w1_spec, b1_spec, w2_spec, b2_spec,
            ],
            out_specs=pl.BlockSpec((tile_t, Dp), lambda i, j: (i, 0)),
            scratch_shapes=[pltpu.VMEM((tile_t, Dp), jnp.float32)],
        ),
        input_output_aliases={0: 0},                 # reuse x2d HBM buffer for out
        compiler_params=pltpu.CompilerParams(
            dimension_semantics=("parallel", "arbitrary"),
            vmem_limit_bytes=int(budget)),
        cost_estimate=cost,
    )(x2d, w1p, b1p, w2p, b2p)

    out2d = out2d if Dp == D else out2d[:, :D]
    return out2d.reshape(B, N, D)


def _reference(x, w1, b1, w2, b2):
    # Pure-JAX reference of Residual(FeedForward) (same gelu variant as kernel).
    h = jax.nn.gelu(x.astype(jnp.float32) @ w1 + b1, approximate=True)
    y = h @ w2 + b2
    return y + x.astype(jnp.float32)


if __name__ == "__main__":
    key = jax.random.PRNGKey(0)

    def make(k, B, N, D, H):
        ks = jax.random.split(k, 5)
        x = jax.random.normal(ks[0], (B, N, D), dtype=jnp.float32)
        w1 = jax.random.normal(ks[1], (D, H), dtype=jnp.float32) * 0.05
        b1 = jax.random.normal(ks[2], (H,), dtype=jnp.float32) * 0.05
        w2 = jax.random.normal(ks[3], (H, D), dtype=jnp.float32) * 0.05
        b2 = jax.random.normal(ks[4], (D,), dtype=jnp.float32) * 0.05
        return x, w1, b1, w2, b2

    k1, k2 = jax.random.split(key)

    # 1) f32 storage, resident single-buffered weights, 2 token tiles.
    x, w1, b1, w2, b2 = make(k1, 2, 8, 32, 64)
    out = jax.block_until_ready(jax.jit(residual_feedforward)(x, w1, b1, w2, b2))
    ref = _reference(x, w1, b1, w2, b2)
    assert out.shape == x.shape
    assert jnp.allclose(out, ref, atol=1e-4, rtol=1e-4), \
        float(jnp.max(jnp.abs(out - ref)))

    # 2) Ragged token count + bf16 MXU feed + forced hidden-chunk streaming
    #    (exercises the large-weight fallback path and masked partial tiles).
    x, w1, b1, w2, b2 = make(k2, 1, 13, 32, 256)
    fused2 = jax.jit(functools.partial(residual_feedforward,
                                       mxu_dtype=jnp.bfloat16,
                                       force_tile_h=128))
    out2 = jax.block_until_ready(fused2(x, w1, b1, w2, b2))
    ref2 = _reference(x, w1, b1, w2, b2)
    assert out2.shape == x.shape
    assert jnp.allclose(out2, ref2, atol=5e-2, rtol=5e-2), \
        float(jnp.max(jnp.abs(out2 - ref2)))

    print("KERNEL_OK")
</pallas_src>

<mosaic_0001>
module attributes {stable_mosaic.version = 11 : i64} {
  func.func @_residual_ff_kernel(%arg0: i32, %arg1: i32, %arg2: memref<8x128xf32, #tpu.memory_space<vmem>>, %arg3: memref<128x128xf32, #tpu.memory_space<vmem>>, %arg4: memref<1x128xf32, #tpu.memory_space<vmem>>, %arg5: memref<128x128xf32, #tpu.memory_space<vmem>>, %arg6: memref<1x128xf32, #tpu.memory_space<vmem>>, %arg7: memref<8x128xf32, #tpu.memory_space<vmem>>, %arg8: memref<8x128xf32, #tpu.memory_space<vmem>>) attributes {dimension_semantics = [#tpu.dimension_semantics<parallel>, #tpu.dimension_semantics<arbitrary>], iteration_bounds = array<i64: 2, 1>, scalar_prefetch = 0 : i64, scratch_operands = 1 : i64, tpu.core_type = #tpu.core_type<tc>, window_params = [{transform_indices = @transform_0, window_bounds = array<i64: 8, 128>}, {pipeline_mode = #tpu.pipeline_mode<synchronous>, transform_indices = @transform_1, window_bounds = array<i64: 128, 128>}, {pipeline_mode = #tpu.pipeline_mode<synchronous>, transform_indices = @transform_2, window_bounds = array<i64: 1, 128>}, {pipeline_mode = #tpu.pipeline_mode<synchronous>, transform_indices = @transform_3, window_bounds = array<i64: 128, 128>}, {pipeline_mode = #tpu.pipeline_mode<synchronous>, transform_indices = @transform_4, window_bounds = array<i64: 1, 128>}, {transform_indices = @transform_5, window_bounds = array<i64: 8, 128>}]} {
    %c0_i32 = arith.constant 0 : i32
    %0 = arith.cmpi eq, %arg1, %c0_i32 : i32
    %1 = arith.extui %0 : i1 to i32
    %c0_i32_0 = arith.constant 0 : i32
    %2 = arith.cmpi ne, %1, %c0_i32_0 : i32
    scf.if %2 {
      %cst_19 = arith.constant 0.000000e+00 : f32
      %30 = vector.broadcast %cst_19 : f32 to vector<8x128xf32>
      %c0_20 = arith.constant 0 : index
      %c0_21 = arith.constant 0 : index
      %31 = vector.load %arg8[%c0_20, %c0_21] : memref<8x128xf32, #tpu.memory_space<vmem>>, vector<8x128xf32>
      tpu.vector_store %arg8[%c0_20, %c0_21], %30 {strides = array<i32>} : memref<8x128xf32, #tpu.memory_space<vmem>>, vector<8x128xf32>,
    } else {
    }
    %c0 = arith.constant 0 : index
    %c0_1 = arith.constant 0 : index
    %3 = vector.load %arg2[%c0, %c0_1] : memref<8x128xf32, #tpu.memory_space<vmem>>, vector<8x128xf32>
    %c0_2 = arith.constant 0 : index
    %c0_3 = arith.constant 0 : index
    %4 = vector.load %arg4[%c0_2, %c0_3] : memref<1x128xf32, #tpu.memory_space<vmem>>, vector<1x128xf32>
    %c0_4 = arith.constant 0 : index
    %c0_5 = arith.constant 0 : index
    %5 = vector.load %arg3[%c0_4, %c0_5] : memref<128x128xf32, #tpu.memory_space<vmem>>, vector<128x128xf32>
    %cst = arith.constant dense<0.000000e+00> : vector<8x128xf32>
    %6 = tpu.matmul %3, %5, %cst {dimension_numbers = #tpu.dot_dimension_numbers<[1], [0], [0], [1], [0, 0, 1, 1], [], []>} : vector<8x128xf32>, vector<128x128xf32>, vector<8x128xf32> -> vector<8x128xf32>
    %7 = vector.broadcast %4 : vector<1x128xf32> to vector<8x128xf32>
    %8 = arith.addf %6, %7 : vector<8x128xf32>
    %9 = arith.mulf %8, %8 : vector<8x128xf32>
    %10 = arith.mulf %8, %9 : vector<8x128xf32>
    %cst_6 = arith.constant 4.471500e-02 : f32
    %11 = vector.broadcast %cst_6 : f32 to vector<8x128xf32>
    %12 = arith.mulf %11, %10 : vector<8x128xf32>
    %13 = arith.addf %8, %12 : vector<8x128xf32>
    %cst_7 = arith.constant 0.797884583 : f32
    %14 = vector.broadcast %cst_7 : f32 to vector<8x128xf32>
    %15 = arith.mulf %14, %13 : vector<8x128xf32>
    %16 = math.tanh %15 : vector<8x128xf32>
    %cst_8 = arith.constant 1.000000e+00 : f32
    %17 = vector.broadcast %cst_8 : f32 to vector<8x128xf32>
    %18 = arith.addf %17, %16 : vector<8x128xf32>
    %cst_9 = arith.constant 5.000000e-01 : f32
    %19 = vector.broadcast %cst_9 : f32 to vector<8x128xf32>
    %20 = arith.mulf %19, %18 : vector<8x128xf32>
    %21 = arith.mulf %8, %20 : vector<8x128xf32>
    %c0_10 = arith.constant 0 : index
    %c0_11 = arith.constant 0 : index
    %22 = vector.load %arg8[%c0_10, %c0_11] : memref<8x128xf32, #tpu.memory_space<vmem>>, vector<8x128xf32>
    %c0_12 = arith.constant 0 : index
    %c0_13 = arith.constant 0 : index
    %23 = vector.load %arg5[%c0_12, %c0_13] : memref<128x128xf32, #tpu.memory_space<vmem>>, vector<128x128xf32>
    %cst_14 = arith.constant dense<0.000000e+00> : vector<8x128xf32>
    %24 = tpu.matmul %21, %23, %cst_14 {dimension_numbers = #tpu.dot_dimension_numbers<[1], [0], [0], [1], [0, 0, 1, 1], [], []>} : vector<8x128xf32>, vector<128x128xf32>, vector<8x128xf32> -> vector<8x128xf32>
    %25 = arith.addf %22, %24 : vector<8x128xf32>
    %c0_15 = arith.constant 0 : index
    %c0_16 = arith.constant 0 : index
    %26 = vector.load %arg8[%c0_15, %c0_16] : memref<8x128xf32, #tpu.memory_space<vmem>>, vector<8x128xf32>
    tpu.vector_store %arg8[%c0_15, %c0_16], %25 {strides = array<i32>} : memref<8x128xf32, #tpu.memory_space<vmem>>, vector<8x128xf32>,
    %c0_i32_17 = arith.constant 0 : i32
    %27 = arith.cmpi eq, %arg1, %c0_i32_17 : i32
    %28 = arith.extui %27 : i1 to i32
    %c0_i32_18 = arith.constant 0 : i32
    %29 = arith.cmpi ne, %28, %c0_i32_18 : i32
    scf.if %29 {
      %c0_19 = arith.constant 0 : index
      %c0_20 = arith.constant 0 : index
      %30 = vector.load %arg6[%c0_19, %c0_20] : memref<1x128xf32, #tpu.memory_space<vmem>>, vector<1x128xf32>
      %c0_21 = arith.constant 0 : index
      %c0_22 = arith.constant 0 : index
      %31 = vector.load %arg8[%c0_21, %c0_22] : memref<8x128xf32, #tpu.memory_space<vmem>>, vector<8x128xf32>
      %32 = vector.broadcast %30 : vector<1x128xf32> to vector<8x128xf32>
      %33 = arith.addf %31, %32 : vector<8x128xf32>
      %34 = arith.addf %33, %3 : vector<8x128xf32>
      %c0_23 = arith.constant 0 : index
      %c0_24 = arith.constant 0 : index
      %35 = vector.load %arg7[%c0_23, %c0_24] : memref<8x128xf32, #tpu.memory_space<vmem>>, vector<8x128xf32>
      tpu.vector_store %arg7[%c0_23, %c0_24], %34 {strides = array<i32>} : memref<8x128xf32, #tpu.memory_space<vmem>>, vector<8x128xf32>,
    } else {
    }
    return
  }
  func.func @transform_0(%arg0: i32, %arg1: i32) -> (i32, i32) {
    %c0_i32 = arith.constant 0 : i32
    %c0_i32_0 = arith.constant 0 : i32
    return %arg0, %c0_i32 : i32, i32
  }
  func.func @transform_1(%arg0: i32, %arg1: i32) -> (i32, i32) {
    %c0_i32 = arith.constant 0 : i32
    %c0_i32_0 = arith.constant 0 : i32
    %c0_i32_1 = arith.constant 0 : i32
    return %c0_i32, %c0_i32_0 : i32, i32
  }
  func.func @transform_2(%arg0: i32, %arg1: i32) -> (i32, i32) {
    %c0_i32 = arith.constant 0 : i32
    %c0_i32_0 = arith.constant 0 : i32
    %c0_i32_1 = arith.constant 0 : i32
    return %c0_i32, %c0_i32_0 : i32, i32
  }
  func.func @transform_3(%arg0: i32, %arg1: i32) -> (i32, i32) {
    %c0_i32 = arith.constant 0 : i32
    %c0_i32_0 = arith.constant 0 : i32
    %c0_i32_1 = arith.constant 0 : i32
    return %c0_i32, %c0_i32_0 : i32, i32
  }
  func.func @transform_4(%arg0: i32, %arg1: i32) -> (i32, i32) {
    %c0_i32 = arith.constant 0 : i32
    %c0_i32_0 = arith.constant 0 : i32
    %c0_i32_1 = arith.constant 0 : i32
    return %c0_i32, %c0_i32_0 : i32, i32
  }
  func.func @transform_5(%arg0: i32, %arg1: i32) -> (i32, i32) {
    %c0_i32 = arith.constant 0 : i32
    %c0_i32_0 = arith.constant 0 : i32
    return %arg0, %c0_i32 : i32, i32
  }
}

</mosaic_0001>

<bundles_post_ra>
// kernel: residual_feedforward.1
= control target key start
LH: loop header
LB: loop body
LE: loop exit
PB: predicated region body
PF: predicated region fallthrough
CT: control target
= control target key end

     0   :  { %s489_s18 = smov 0   ;;  %s491_s19 = smov 0   ;;  %s635_s0 = inlined_call_operand.vmem [shape: f32[16,128], index: 0, kind: input, shape index: {}, may-alias: {0,5}]   ;;  %s636_s1 = inlined_call_operand.vmem [shape: f32[128,128], index: 1, kind: input, shape index: {}]   ;;  %s637_s2 = inlined_call_operand.vmem [shape: f32[1,128], index: 2, kind: input, shape index: {}]   ;;  %s638_s3 = inlined_call_operand.vmem [shape: f32[128,128], index: 3, kind: input, shape index: {}]   ;;  %s639_s4 = inlined_call_operand.vmem [shape: f32[1,128], index: 4, kind: input, shape index: {}]   ;;  %s640_s5 = inlined_call_operand.vmem [shape: f32[16,128], index: 5, kind: output, shape index: {}, may-alias: {0,5}]  }
   0x1   :  { %s493_s20 = smov 0  }
   0x2 LB: > { %s27_s21 = sadd.s32 1, %s453_s19  ;;  %p402_p0 = scmp.ge.s32.totalorder %s457_s20, 1  ;;  %s457_s20 = sphi %s493_s20, %s15_s20   ;;  %s453_s19 = sphi %s491_s19, %s642_s19   ;;  %s449_s18 = sphi %s489_s18, %s641_s18  }
   0x3   : > { %p29_p1 = scmp.ge.s32.totalorder %s27_s21, 2  ;;  %p198_p2 = scmp.lt.s32.totalorder %s457_s20, 3 }
   0x5   : > { %s644_s21 = smov (%p29_p1, %s27_s21), 0  ;;  %p199_p3 = pnand %p402_p0, %p198_p2 }
   0x6   : > { %p224_p4 = scmp.lt.s32.totalorder (!%p199_p3), %s449_s18, 1 }
   0x7   : > { %202 = sbr.rel (%p199_p3) target bundleno = 326 (0x146), region = 40 }
   0xc   : > { %v254_v0 = vld [vmem:[%s636_s1 + $0x78] sm:$0xff]  ;;  %v253_v1 = vld [vmem:[%s636_s1 + $0x70] sm:$0xff]  ;;  %v252_v2 = vld [vmem:[%s636_s1 + $0x68] sm:$0xff]  ;;  %s646_s18 = smov (!%p224_p4, %s449_s18), 1 }
   0xd   : > { %258 = vmatpush.msra.mxu0 %v254_v0  ;;  %v251_v3 = vld [vmem:[%s636_s1 + $0x60] sm:$0xff]  ;;  %v303_v4 = vld [vmem:[%s638_s3 + $0x78] sm:$0xff]  ;;  %v302_v5 = vld [vmem:[%s638_s3 + $0x70] sm:$0xff]  ;;  %s403_s8 = sshll.u32 %s646_s18, 3 }
   0xe   : > { %v250_v6 = vld [vmem:[%s636_s1 + $0x58] sm:$0xff]  ;;  %304 = vmatpush.msra.mxu1 %v303_v4  ;;  %v301_v7 = vld [vmem:[%s638_s3 + $0x68] sm:$0xff]  ;;  %v249_v8 = vld [vmem:[%s636_s1 + $0x50] sm:$0xff]  ;;  %s227_s15 = scalar_lea.vmem %s635_s0, %s403_s8  ;;  %s231_s10 = scalar_lea.vmem %s640_s5, %s403_s8 }
   0xf   : > { %259 = vmatpush.msra.mxu0 %v253_v1  ;;  %v248_v9 = vld [vmem:[%s636_s1 + $0x48] sm:$0xff]  ;;  %v247_v10 = vld [vmem:[%s636_s1 + $0x40] sm:$0xff]  ;;  %v246_v11 = vld [vmem:[%s636_s1 + $0x38] sm:$0xff] }
  0x10   : > { %305 = vmatpush.msra.mxu1 %v302_v5  ;;  %v245_v12 = vld [vmem:[%s636_s1 + $0x30] sm:$0xff]  ;;  %v244_v13 = vld [vmem:[%s636_s1 + $0x28] sm:$0xff]  ;;  %v243_v14 = vld [vmem:[%s636_s1 + $0x20] sm:$0xff] }
  0x11   : > { %260 = vmatpush.msra.mxu0 %v252_v2  ;;  %v242_v15 = vld [vmem:[%s636_s1 + $0x18] sm:$0xff]  ;;  %v241_v16 = vld [vmem:[%s636_s1 + $0x10] sm:$0xff]  ;;  %v240_v17 = vld [vmem:[%s636_s1 + $0x8] sm:$0xff] }
  0x12   : > { %306 = vmatpush.msra.mxu1 %v301_v7  ;;  %v239_v18 = vld [vmem:[%s636_s1] sm:$0xff]  ;;  %v299_v21 = vld [vmem:[%s638_s3 + $0x58] sm:$0xff]  ;;  %v298_v22 = vld [vmem:[%s638_s3 + $0x50] sm:$0xff] }
  0x13   : > { %261 = vmatpush.msra.mxu0 %v251_v3  ;;  %v237_v19 = vld [vmem:[%s227_s15] sm:$0xff]  ;;  %v297_v23 = vld [vmem:[%s638_s3 + $0x48] sm:$0xff]  ;;  %v295_v25 = vld [vmem:[%s638_s3 + $0x38] sm:$0xff] }
  0x14   : > { %v300_v20 = vld [vmem:[%s638_s3 + $0x60] sm:$0xff]  ;;  %v294_v26 = vld [vmem:[%s638_s3 + $0x30] sm:$0xff]  ;;  %v293_v27 = vld [vmem:[%s638_s3 + $0x28] sm:$0xff] }
  0x15   : > { %262 = vmatpush.msra.mxu0 %v250_v6  ;;  %307 = vmatpush.msra.mxu1 %v300_v20  ;;  %v296_v24 = vld [vmem:[%s638_s3 + $0x40] sm:$0xff]  ;;  %v291_v29 = vld [vmem:[%s638_s3 + $0x18] sm:$0xff]  ;;  %v290_v30 = vld [vmem:[%s638_s3 + $0x10] sm:$0xff] }
  0x16   : > { %v292_v28 = vld [vmem:[%s638_s3 + $0x20] sm:$0xff]  ;;  %v289_v31 = vld [vmem:[%s638_s3 + $0x8] sm:$0xff] }
  0x17   : > { %263 = vmatpush.msra.mxu0 %v249_v8  ;;  %308 = vmatpush.msra.mxu1 %v299_v21  ;;  %v288_v32 = vld [vmem:[%s638_s3] sm:$0xff] }
  0x18   : > { %v431_v33 = vld [vmem:[%s637_s2] ss:$0 sm:$0xff] }
  0x19   : > { %264 = vmatpush.msra.mxu0 %v248_v9  ;;  %309 = vmatpush.msra.mxu1 %v298_v22  ;;  %v432_v45 = vld [vmem:[%s639_s4] ss:$0 sm:$0xff] }
  0x1b   : > { %265 = vmatpush.msra.mxu0 %v247_v10  ;;  %310 = vmatpush.msra.mxu1 %v297_v23 }
  0x1d   : > { %266 = vmatpush.msra.mxu0 %v246_v11  ;;  %311 = vmatpush.msra.mxu1 %v296_v24 }
  0x1f   : > { %267 = vmatpush.msra.mxu0 %v245_v12  ;;  %312 = vmatpush.msra.mxu1 %v295_v25 }
  0x21   : > { %268 = vmatpush.msra.mxu0 %v244_v13  ;;  %313 = vmatpush.msra.mxu1 %v294_v26 }
  0x23   : > { %269 = vmatpush.msra.mxu0 %v243_v14  ;;  %314 = vmatpush.msra.mxu1 %v293_v27 }
  0x25   : > { %270 = vmatpush.msra.mxu0 %v242_v15  ;;  %315 = vmatpush.msra.mxu1 %v292_v28 }
  0x27   : > { %271 = vmatpush.msra.mxu0 %v241_v16  ;;  %316 = vmatpush.msra.mxu1 %v291_v29 }
  0x29   : > { %272 = vmatpush.msra.mxu0 %v240_v17  ;;  %317 = vmatpush.msra.mxu1 %v290_v30 }
  0x2b   : > { %273 = vmatpush.msra.mxu0 %v239_v18  ;;  %318 = vmatpush.msra.mxu1 %v289_v31 }
  0x2c   : > { %274 = vmatmul.f32.vlgmr.msra.gmra.mxu0 %v237_v19 }
  0x2d   : > { %319 = vmatpush.msra.mxu1 %v288_v32 }
  0xa9   : > { %v275_v34 = vpop.f32.mrf.mxu0 }
  0xaa   : > { %v276_v35 = vadd.f32 %v431_v33, %v275_v34 }
  0xac   : > { %v278_v36 = vmul.f32 %v276_v35, %v276_v35 }
  0xae   : > { %v279_v37 = vmul.f32 %v278_v36, %v276_v35 }
  0xb0   : > { %v280_v38 = vmul.f32 0.044715, %v279_v37 }
  0xb2   : > { %v281_v39 = vadd.f32 %v280_v38, %v276_v35 }
  0xb4   : > { %v282_v40 = vmul.f32 0.7978846, %v281_v39 }
  0xb6   : > { %433 = vtanh.f32 %v282_v40 }
  0xbc   : > { %v434_v41 = vpop.eup %433 }
  0xbd   : > { %v284_v42 = vadd.f32 1.0, %v434_v41 }
  0xbf   : > { %v285_v43 = vmul.f32 0.5, %v284_v42 }
  0xc1   : > { %v286_v44 = vmul.f32 %v285_v43, %v276_v35 }
  0xc3   : > { %320 = vmatmul.f32.vlgmr.msra.gmra.mxu1 %v286_v44 }
 0x140   : > { %v321_v46 = vpop.f32.mrf.mxu1 }
 0x141   : > { %v334_v47 = vadd.f32 %v432_v45, %v321_v46 }
 0x143   : > { %v335_v48 = vadd.f32 %v334_v47, %v237_v19 }
 0x145   : > { %336 = vst [vmem:[%s231_s10] sm:$0xff] %v335_v48 }
 0x146 PF: > { %s15_s20 = sadd.s32 1, %s457_s20   ;;  %s641_s18 = smov %s453_s19 }
 0x147   : > { %p12_p5 = scmp.ge.s32.totalorder %s15_s20, 4   ;;  %s642_s19 = smov %s644_s21 }
 0x149   :  { %14 = sbr.rel (!%p12_p5) target bundleno = 2 (0x2), region = 78 }

</bundles_post_ra>
